<compile_context>
chip_gen: v7x
topology: tpu7x:2x2x1
jax: 0.10.0
libtpu: 0.0.40
codegen_flags: <defaults>
</compile_context>

<pallas_src>
import functools

import jax
import jax.numpy as jnp
from jax.experimental import pallas as pl
from jax.experimental.pallas import tpu as pltpu

KERNEL_SIZE = 3  # matches `kernel_size = 3` in the PyTorch source


def _residual_block_kernel(x_ref, w_ref, col_ref, o_ref, xpad_ref, *, W, PAD):
    """One image: o = relu(x + conv3x3_same(x, w)), channels-first flat layout.

    x_ref:    (C, H*W)               input image, spatial flattened onto lanes
    w_ref:    (C, 9*C)               weights, VMEM-resident across the grid
    col_ref:  (C, H*W) int32         x-coordinate of each flattened position
    o_ref:    (C, H*W)               output
    xpad_ref: (C, PAD + H*W + PAD)   scratch, zero halo of PAD lanes each side
    """
    C, HW = x_ref.shape
    x = x_ref[...]

    # Zero only the two halo blocks (lane-aligned, tiny); the interior is
    # fully overwritten below - no full-scratch memset per step.
    xpad_ref[:, :PAD] = jnp.zeros((C, PAD), xpad_ref.dtype)
    xpad_ref[:, PAD + HW:] = jnp.zeros((C, PAD), xpad_ref.dtype)
    xpad_ref[:, PAD:PAD + HW] = x            # lane-aligned store (PAD % 128 == 0)

    # Horizontal edge masks (precomputed column ids; vertical out-of-bounds
    # taps land in the zero halo automatically since PAD >= W+1).
    col = col_ref[...]
    left_edge = col == 0
    right_edge = col == (W - 1)

    # im2col: 9 statically shifted views of the flat-padded image, stacked
    # along the contraction axis.
    taps = []
    for ddy in (-1, 0, 1):
        for ddx in (-1, 0, 1):
            s = ddy * W + ddx
            t = xpad_ref[:, PAD + s:PAD + s + HW]
            if ddx == -1:
                t = jnp.where(left_edge, 0.0, t)
            elif ddx == 1:
                t = jnp.where(right_edge, 0.0, t)
            taps.append(t)
    patches = jnp.concatenate(taps, axis=0)              # (9*C, H*W)

    # Single MXU contraction (K = 9*C) with f32 accumulation.
    acc = jnp.dot(w_ref[...], patches, preferred_element_type=jnp.float32)

    # Fused epilogue: residual add + ReLU; lane-dense (H*W on lanes) store.
    y = acc + x.astype(jnp.float32)
    o_ref[...] = jnp.maximum(y, 0.0).astype(o_ref.dtype)


@jax.jit
def residual_block_forward(x, w):
    """x: (B, C, H, W) NCHW; w: (C_out, C_in, 3, 3) OIHW (torch-native layouts).

    Returns relu(x + conv2d_same(x, w)) with stride 1, no bias, no BN.
    """
    B, C, H, W = x.shape
    c_out, c_in, kh, kw = w.shape
    assert (kh, kw) == (KERNEL_SIZE, KERNEL_SIZE)
    assert c_in == C and c_out == C, "residual add requires C_in == C_out"

    HW = H * W                               # lane axis (best if multiple of 128)
    CP = ((C + 7) // 8) * 8                  # channels padded to sublane granule
    PAD = ((W + 1 + 127) // 128) * 128       # lane-aligned spatial halo >= W+1

    # Wrapper-side layout plumbing (free): channels-first flat activations,
    # channel padding, weights repacked to (C_out, 9*C_in), column-id table.
    x_cf = jnp.pad(x.reshape(B, C, HW), ((0, 0), (0, CP - C), (0, 0)))
    w_t = jnp.transpose(w, (0, 2, 3, 1))                       # (co, ky, kx, ci)
    w_t = jnp.pad(w_t, ((0, CP - C), (0, 0), (0, 0), (0, CP - C)))
    w2 = w_t.reshape(CP, kh * kw * CP)                         # (C_out, 9*C_in)
    col_ids = jax.lax.broadcasted_iota(jnp.int32, (CP, HW), 1) % W

    flops = 2 * B * HW * kh * kw * C * C + 2 * B * HW * C
    bytes_accessed = x.dtype.itemsize * (2 * B * CP * HW + CP * kh * kw * CP)

    out = pl.pallas_call(
        functools.partial(_residual_block_kernel, W=W, PAD=PAD),
        out_shape=jax.ShapeDtypeStruct((B, CP, HW), x.dtype),
        grid_spec=pltpu.PrefetchScalarGridSpec(
            num_scalar_prefetch=0,
            # One image per step; grid length B (>= 2) keeps both v7x TCs busy.
            grid=(B,),
            in_specs=[
                pl.BlockSpec((None, CP, HW), lambda b: (b, 0, 0)),
                # Constant index_maps -> weights / col ids stay VMEM-resident.
                pl.BlockSpec((CP, kh * kw * CP), lambda b: (0, 0)),
                pl.BlockSpec((CP, HW), lambda b: (0, 0)),
            ],
            out_specs=pl.BlockSpec((None, CP, HW), lambda b: (b, 0, 0)),
            scratch_shapes=[pltpu.VMEM((CP, PAD + HW + PAD), x.dtype)],
        ),
        compiler_params=pltpu.CompilerParams(
            dimension_semantics=("parallel",)),
        cost_estimate=pl.CostEstimate(flops=flops, transcendentals=0,
                                      bytes_accessed=bytes_accessed),
    )(x_cf, w2, col_ids)

    return out[:, :C, :].reshape(B, C, H, W)


def init_conv_weight(key, c_in, c_out, k=KERNEL_SIZE):
    """torch Conv2d default init (kaiming_uniform, a=sqrt(5)) in OIHW layout."""
    bound = 1.0 / jnp.sqrt(jnp.float32(c_in * k * k))
    return jax.random.uniform(key, (c_out, c_in, k, k), jnp.float32, -bound, bound)


def residual_block_reference(x, w):
    conv = jax.lax.conv_general_dilated(
        x, w, window_strides=(1, 1), padding="SAME",
        dimension_numbers=("NCHW", "OIHW", "NCHW"),
        precision=jax.lax.Precision.HIGHEST)
    return jnp.maximum(x + conv, 0.0)


if __name__ == "__main__":
    key = jax.random.PRNGKey(0)
    k_x, k_w = jax.random.split(key)

    # Small shapes consistent with the module: batch=2, channels=4, spatial=16.
    B, C, H, W = 2, 4, 16, 16
    x = jax.random.normal(k_x, (B, C, H, W), jnp.float32)   # NCHW (torch layout)
    w = init_conv_weight(k_w, C, C)                         # OIHW (torch layout)

    y = residual_block_forward(x, w)
    jax.block_until_ready(y)

    y_ref = residual_block_reference(x, w)
    assert y.shape == (B, C, H, W)
    assert jnp.allclose(y, y_ref, atol=1e-3, rtol=1e-3)

    print("KERNEL_OK")
</pallas_src>

<mosaic_0001>
module attributes {stable_mosaic.version = 11 : i64} {
  func.func @_residual_block_kernel(%arg0: i32, %arg1: memref<1x8x256xf32, #tpu.memory_space<vmem>>, %arg2: memref<8x72xf32, #tpu.memory_space<vmem>>, %arg3: memref<8x256xi32, #tpu.memory_space<vmem>>, %arg4: memref<1x8x256xf32, #tpu.memory_space<vmem>>, %arg5: memref<8x512xf32, #tpu.memory_space<vmem>>) attributes {dimension_semantics = [#tpu.dimension_semantics<parallel>], iteration_bounds = array<i64: 2>, scalar_prefetch = 0 : i64, scratch_operands = 1 : i64, tpu.core_type = #tpu.core_type<tc>, window_params = [{transform_indices = @transform_0, window_bounds = array<i64: 1, 8, 256>}, {pipeline_mode = #tpu.pipeline_mode<synchronous>, transform_indices = @transform_1, window_bounds = array<i64: 8, 72>}, {pipeline_mode = #tpu.pipeline_mode<synchronous>, transform_indices = @transform_2, window_bounds = array<i64: 8, 256>}, {transform_indices = @transform_3, window_bounds = array<i64: 1, 8, 256>}]} {
    %c0 = arith.constant 0 : index
    %c0_0 = arith.constant 0 : index
    %c0_1 = arith.constant 0 : index
    %0 = vector.load %arg1[%c0, %c0_0, %c0_1] : memref<1x8x256xf32, #tpu.memory_space<vmem>>, vector<1x8x256xf32>
    %1 = vector.shape_cast %0 : vector<1x8x256xf32> to vector<8x256xf32>
    %cst = arith.constant 0.000000e+00 : f32
    %2 = vector.broadcast %cst : f32 to vector<8x128xf32>
    %c0_2 = arith.constant 0 : index
    %c0_3 = arith.constant 0 : index
    %3 = vector.load %arg5[%c0_2, %c0_3] : memref<8x512xf32, #tpu.memory_space<vmem>>, vector<8x128xf32>
    tpu.vector_store %arg5[%c0_2, %c0_3], %2 {strides = array<i32>} : memref<8x512xf32, #tpu.memory_space<vmem>>, vector<8x128xf32>,
    %cst_4 = arith.constant 0.000000e+00 : f32
    %4 = vector.broadcast %cst_4 : f32 to vector<8x128xf32>
    %c0_5 = arith.constant 0 : index
    %c384 = arith.constant 384 : index
    %5 = vector.load %arg5[%c0_5, %c384] : memref<8x512xf32, #tpu.memory_space<vmem>>, vector<8x128xf32>
    tpu.vector_store %arg5[%c0_5, %c384], %4 {strides = array<i32>} : memref<8x512xf32, #tpu.memory_space<vmem>>, vector<8x128xf32>,
    %c0_6 = arith.constant 0 : index
    %c128 = arith.constant 128 : index
    %6 = vector.load %arg5[%c0_6, %c128] : memref<8x512xf32, #tpu.memory_space<vmem>>, vector<8x256xf32>
    tpu.vector_store %arg5[%c0_6, %c128], %1 {strides = array<i32>} : memref<8x512xf32, #tpu.memory_space<vmem>>, vector<8x256xf32>,
    %c0_7 = arith.constant 0 : index
    %c0_8 = arith.constant 0 : index
    %7 = vector.load %arg3[%c0_7, %c0_8] : memref<8x256xi32, #tpu.memory_space<vmem>>, vector<8x256xi32>
    %c0_i32 = arith.constant 0 : i32
    %8 = vector.broadcast %c0_i32 : i32 to vector<8x256xi32>
    %9 = arith.cmpi eq, %7, %8 : vector<8x256xi32>
    %c15_i32 = arith.constant 15 : i32
    %10 = vector.broadcast %c15_i32 : i32 to vector<8x256xi32>
    %11 = arith.cmpi eq, %7, %10 : vector<8x256xi32>
    %c0_9 = arith.constant 0 : index
    %c111 = arith.constant 111 : index
    %12 = vector.load %arg5[%c0_9, %c111] : memref<8x512xf32, #tpu.memory_space<vmem>>, vector<8x256xf32>
    %cst_10 = arith.constant 0.000000e+00 : f32
    %13 = vector.broadcast %cst_10 : f32 to vector<8x256xf32>
    %14 = arith.select %9, %13, %12 : vector<8x256xi1>, vector<8x256xf32>
    %c0_11 = arith.constant 0 : index
    %c112 = arith.constant 112 : index
    %15 = vector.load %arg5[%c0_11, %c112] : memref<8x512xf32, #tpu.memory_space<vmem>>, vector<8x256xf32>
    %c0_12 = arith.constant 0 : index
    %c113 = arith.constant 113 : index
    %16 = vector.load %arg5[%c0_12, %c113] : memref<8x512xf32, #tpu.memory_space<vmem>>, vector<8x256xf32>
    %cst_13 = arith.constant 0.000000e+00 : f32
    %17 = vector.broadcast %cst_13 : f32 to vector<8x256xf32>
    %18 = arith.select %11, %17, %16 : vector<8x256xi1>, vector<8x256xf32>
    %c0_14 = arith.constant 0 : index
    %c127 = arith.constant 127 : index
    %19 = vector.load %arg5[%c0_14, %c127] : memref<8x512xf32, #tpu.memory_space<vmem>>, vector<8x256xf32>
    %cst_15 = arith.constant 0.000000e+00 : f32
    %20 = vector.broadcast %cst_15 : f32 to vector<8x256xf32>
    %21 = arith.select %9, %20, %19 : vector<8x256xi1>, vector<8x256xf32>
    %c0_16 = arith.constant 0 : index
    %c128_17 = arith.constant 128 : index
    %22 = vector.load %arg5[%c0_16, %c128_17] : memref<8x512xf32, #tpu.memory_space<vmem>>, vector<8x256xf32>
    %c0_18 = arith.constant 0 : index
    %c129 = arith.constant 129 : index
    %23 = vector.load %arg5[%c0_18, %c129] : memref<8x512xf32, #tpu.memory_space<vmem>>, vector<8x256xf32>
    %cst_19 = arith.constant 0.000000e+00 : f32
    %24 = vector.broadcast %cst_19 : f32 to vector<8x256xf32>
    %25 = arith.select %11, %24, %23 : vector<8x256xi1>, vector<8x256xf32>
    %c0_20 = arith.constant 0 : index
    %c143 = arith.constant 143 : index
    %26 = vector.load %arg5[%c0_20, %c143] : memref<8x512xf32, #tpu.memory_space<vmem>>, vector<8x256xf32>
    %cst_21 = arith.constant 0.000000e+00 : f32
    %27 = vector.broadcast %cst_21 : f32 to vector<8x256xf32>
    %28 = arith.select %9, %27, %26 : vector<8x256xi1>, vector<8x256xf32>
    %c0_22 = arith.constant 0 : index
    %c144 = arith.constant 144 : index
    %29 = vector.load %arg5[%c0_22, %c144] : memref<8x512xf32, #tpu.memory_space<vmem>>, vector<8x256xf32>
    %c0_23 = arith.constant 0 : index
    %c145 = arith.constant 145 : index
    %30 = vector.load %arg5[%c0_23, %c145] : memref<8x512xf32, #tpu.memory_space<vmem>>, vector<8x256xf32>
    %cst_24 = arith.constant 0.000000e+00 : f32
    %31 = vector.broadcast %cst_24 : f32 to vector<8x256xf32>
    %32 = arith.select %11, %31, %30 : vector<8x256xi1>, vector<8x256xf32>
    %33 = tpu.concatenate %14, %15, %18, %21, %22, %25, %28, %29, %32 in 0 : vector<8x256xf32>, vector<8x256xf32>, vector<8x256xf32>, vector<8x256xf32>, vector<8x256xf32>, vector<8x256xf32>, vector<8x256xf32>, vector<8x256xf32>, vector<8x256xf32> -> vector<72x256xf32>
    %c0_25 = arith.constant 0 : index
    %c0_26 = arith.constant 0 : index
    %34 = vector.load %arg2[%c0_25, %c0_26] : memref<8x72xf32, #tpu.memory_space<vmem>>, vector<8x72xf32>
    %cst_27 = arith.constant dense<0.000000e+00> : vector<8x256xf32>
    %35 = tpu.matmul %34, %33, %cst_27 {dimension_numbers = #tpu.dot_dimension_numbers<[1], [0], [0], [1], [0, 0, 1, 1], [], []>} : vector<8x72xf32>, vector<72x256xf32>, vector<8x256xf32> -> vector<8x256xf32>
    %36 = arith.addf %35, %1 : vector<8x256xf32>
    %cst_28 = arith.constant 0.000000e+00 : f32
    %37 = vector.broadcast %cst_28 : f32 to vector<8x256xf32>
    %38 = arith.maximumf %36, %37 : vector<8x256xf32>
    %c0_29 = arith.constant 0 : index
    %c0_30 = arith.constant 0 : index
    %c0_31 = arith.constant 0 : index
    %39 = vector.load %arg4[%c0_29, %c0_30, %c0_31] : memref<1x8x256xf32, #tpu.memory_space<vmem>>, vector<1x8x256xf32>
    %40 = vector.shape_cast %39 : vector<1x8x256xf32> to vector<8x256xf32>
    %41 = vector.shape_cast %38 : vector<8x256xf32> to vector<1x8x256xf32>
    tpu.vector_store %arg4[%c0_29, %c0_30, %c0_31], %41 {strides = array<i32>} : memref<1x8x256xf32, #tpu.memory_space<vmem>>, vector<1x8x256xf32>,
    return
  }
  func.func @transform_0(%arg0: i32) -> (i32, i32, i32) {
    %c0_i32 = arith.constant 0 : i32
    %c0_i32_0 = arith.constant 0 : i32
    %c0_i32_1 = arith.constant 0 : i32
    return %arg0, %c0_i32, %c0_i32_0 : i32, i32, i32
  }
  func.func @transform_1(%arg0: i32) -> (i32, i32) {
    %c0_i32 = arith.constant 0 : i32
    %c0_i32_0 = arith.constant 0 : i32
    %c0_i32_1 = arith.constant 0 : i32
    return %c0_i32, %c0_i32_0 : i32, i32
  }
  func.func @transform_2(%arg0: i32) -> (i32, i32) {
    %c0_i32 = arith.constant 0 : i32
    %c0_i32_0 = arith.constant 0 : i32
    %c0_i32_1 = arith.constant 0 : i32
    return %c0_i32, %c0_i32_0 : i32, i32
  }
  func.func @transform_3(%arg0: i32) -> (i32, i32, i32) {
    %c0_i32 = arith.constant 0 : i32
    %c0_i32_0 = arith.constant 0 : i32
    %c0_i32_1 = arith.constant 0 : i32
    return %arg0, %c0_i32, %c0_i32_0 : i32, i32, i32
  }
}

</mosaic_0001>

<bundles_post_ra>
// kernel: residual_block_forward.1
= control target key start
LH: loop header
LB: loop body
LE: loop exit
PB: predicated region body
PF: predicated region fallthrough
CT: control target
= control target key end

     0   :  { %s587_s12 = smov 0   ;;  %s688_s0 = inlined_call_operand.vmem [shape: f32[2,8,256], index: 0, kind: input, shape index: {}]   ;;  %s689_s1 = inlined_call_operand.vmem [shape: f32[8,72], index: 1, kind: input, shape index: {}]   ;;  %s690_s2 = inlined_call_operand.vmem [shape: s32[8,256], index: 2, kind: input, shape index: {}]   ;;  %s691_s3 = inlined_call_operand.vmem [shape: f32[2,8,256], index: 3, kind: output, shape index: {}]  }
   0x1 LB: > { %s430_s13 = sadd.s32 4294967295, %s555_s12   ;;  %p434_p0 = scmp.ge.s32.totalorder %s555_s12, 1  ;;  %s555_s12 = sphi %s587_s12, %s13_s12  }
   0x2   : > { %p137_p1 = scmp.lt.s32.totalorder %s555_s12, 3 }
   0x4   : > { %p138_p2 = pnand %p434_p0, %p137_p1 }
   0x5   : > { %p161_p3 = scmp.lt.s32.totalorder (!%p138_p2), %s430_s13, 1  ;;  %v557_v0 = vmov (!%p138_p2), 0.0   ;;  %s558_s14 = smov (!%p138_p2), 17   ;;  %v618_v9 = vld [vmem:[%s690_s2 + $0x8] sm:$0xff] (!%p138_p2)  ;;  %v623_v10 = vld [vmem:[%s690_s2] sm:$0xff] (!%p138_p2)  ;;  %vm195_vm0 = vcmask (!%p138_p2), 138240  }
   0x6   : > { %141 = sbr.rel (%p138_p2) target bundleno = 386 (0x182), region = 32  ;;  %189 = vrot.lane.b32.xlu1 (!%p138_p2), %v557_v0, %s558_s14  ;;  %364 = vmatprep.mubr.f32.mxu0 (!%p138_p2), %v557_v0  ;;  %s559_s19 = smov (!%p138_p2), 16   ;;  %vm279_vm1 = vcmask (!%p138_p2), 130048   ;;  %vm468_vm2 = vcmp.ne.s32.totalorder (!%p138_p2), %v618_v9, 0  ;;  %vm469_vm3 = vcmp.ne.s32.totalorder (!%p138_p2), %v623_v10, 0  ;;  %vm221_vm4 = vcmask (!%p138_p2), 7168  }
   0x7   : > { %s560_s20 = smov (!%p138_p2), 1   ;;  %s561_s21 = smov (!%p138_p2), 15   ;;  %vm566_vm5 = vmmov (!%p138_p2), 1   ;;  %vm470_vm7 = vcmp.ne.s32.totalorder (!%p138_p2), %v618_v9, 15  ;;  %vm208_vm9 = vcmask (!%p138_p2), 121856   ;;  %vm471_vm10 = vcmp.ne.s32.totalorder (!%p138_p2), %v623_v10, 15 }
   0x8   : > { %s562_s22 = smov (!%p138_p2), 127   ;;  %s563_s23 = smov (!%p138_p2), 112   ;;  %vm631_vm6 = vmpackc.low (!%p138_p2), %vm566_vm5, %vm468_vm2  ;;  %vm240_vm13 = vcmask (!%p138_p2), 1039360   ;;  %vm290_vm14 = vcmask (!%p138_p2), 916480   ;;  %v295_v63 = vld [vmem:[%s689_s1] sm:$0xff] (!%p138_p2) }
   0x9   : > { %s564_s24 = smov (!%p138_p2), 113   ;;  %s565_s25 = smov (!%p138_p2), 111   ;;  %vm640_vm8 = vmpackc.low (!%p138_p2), %vm566_vm5, %vm469_vm3 }
   0xa   : > { %273 = vrot.lane.b32.xlu1 (!%p138_p2), %v557_v0, %s559_s19  ;;  %vm479_vm11 = vmpackc.low (!%p138_p2), %vm468_vm2, %vm470_vm7  ;;  %vm266_vm2 = vcmask (!%p138_p2), 908288  }
   0xb   : > { %vm482_vm12 = vmpackc.low (!%p138_p2), %vm469_vm3, %vm471_vm10  ;;  %vm296_vm3 = vcmask (!%p138_p2), 588800  }
   0xc   : > { %vm485_vm15 = vmpackc.low (!%p138_p2), %vm470_vm7, %vm566_vm5 }
   0xd   : > { %s697_s13 = smov (!%p161_p3, %s430_s13), 1 }
   0xe   : > { %s466_s15 = sshll.u32 %s697_s13, 4 }
   0xf   : > { %s165_s18 = scalar_lea.vmem %s688_s0, %s466_s15  ;;  %s170_s7 = scalar_lea.vmem %s691_s3, %s466_s15 }
  0x10   : > { %v603_v1 = vld [vmem:[%s165_s18] sm:$0xff]  ;;  %v605_v2 = vld [vmem:[%s165_s18 + $0x8] sm:$0xff] }
  0x11   : > { %v514_v3 = vpack.i.bf16 %v605_v2, %v603_v1  ;;  %v544_v4 = vpack.i.bf16 %v557_v0, %v605_v2 }
  0x13   : > { %515 = vrot.lane.b32.xlu0 %v514_v3, %s558_s14  ;;  %530 = vrot.lane.b32.xlu1 %v514_v3, %s560_s20 }
  0x17   : > { %520 = vrot.lane.b32.xlu0 %v514_v3, %s559_s19  ;;  %215 = vrot.lane.b32.xlu1 %v557_v0, %s560_s20 }
  0x1b   : > { %525 = vrot.lane.b32.xlu0 %v514_v3, %s561_s21  ;;  %234 = vrot.lane.b32.xlu1 %v603_v1, %s562_s22 }
  0x1f   : > { %202 = vrot.lane.b32.xlu0 %v557_v0, %s561_s21  ;;  %545 = vrot.lane.b32.xlu1 %v544_v4, %s563_s23 }
  0x23   : > { %535 = vrot.lane.b32.xlu0 %v544_v4, %s562_s22  ;;  %284 = vrot.lane.b32.xlu1 %v603_v1, %s563_s23 }
  0x27   : > { %540 = vrot.lane.b32.xlu0 %v544_v4, %s564_s24  ;;  %264 = vrot.lane.b32.xlu1 %v557_v0, %s565_s25 }
  0x2b   : > { %247 = vrot.lane.b32.xlu0 %v603_v1, %s564_s24 }
  0x2f   : > { %262 = vrot.lane.b32.xlu0 %v605_v2, %s565_s25 }
  0x33   : > { %260 = vrot.lane.b32.xlu0 %v603_v1, %s565_s25 }
  0x78   : > { %v190_v5 = vpop.permute.xlu1 %189 }
  0x7c   : > { %v274_v6 = vpop.permute.xlu1 %273 }
  0x85   : > { %v516_v7 = vpop.permute.xlu0 %515  ;;  %v531_v8 = vpop.permute.xlu1 %530 }
  0x86   : > { %v518_v11 = vunpack.i.h.bf16 %v516_v7  ;;  %v517_v12 = vunpack.i.l.bf16 %v516_v7  ;;  %v533_v17 = vunpack.i.h.bf16 %v531_v8  ;;  %v532_v18 = vunpack.i.l.bf16 %v531_v8 }
  0x88   : > { %v197_v19 = vsel %vm195_vm0, %v517_v12, %v518_v11  ;;  %v196_v22 = vsel %vm195_vm0, %v190_v5, %v517_v12  ;;  %v223_v31 = vsel %vm221_vm4, %v532_v18, %v533_v17  ;;  %vm488_vm0 = vmpackc.low %vm471_vm10, %vm566_vm5 }
  0x89   : > { %v521_v13 = vpop.permute.xlu0 %520  ;;  %v216_v14 = vpop.permute.xlu1 %215 }
  0x8a   : > { %v523_v15 = vunpack.i.h.bf16 %v521_v13  ;;  %v522_v16 = vunpack.i.l.bf16 %v521_v13  ;;  %v222_v32 = vsel %vm221_vm4, %v216_v14, %v532_v18 }
  0x8c   : > { %v281_v20 = vsel %vm279_vm1, %v522_v16, %v523_v15  ;;  %v280_v23 = vsel %vm279_vm1, %v274_v6, %v522_v16  ;;  %vm253_vm1 = vcmask 924672  }
  0x8d   : > { %v526_v24 = vpop.permute.xlu0 %525  ;;  %v472_v25 = vpack.c.bf16 %v281_v20, %v197_v19  ;;  %v475_v26 = vpack.c.bf16 %v280_v23, %v196_v22  ;;  %v235_v28 = vpop.permute.xlu1 %234 }
  0x8e   : > { %v528_v29 = vunpack.i.h.bf16 %v526_v24  ;;  %v527_v30 = vunpack.i.l.bf16 %v526_v24 }
  0x8f   : > { %474 = vmatprep.subr.msk.bf16.mxu0 %vm631_vm6, %v472_v25 }
  0x90   : > { %477 = vmatpush1.bf16.msk.msra.mxu0 %vm640_vm8, %v475_v26  ;;  %v210_v33 = vsel %vm208_vm9, %v527_v30, %v528_v29 }
  0x91   : > { %v203_v34 = vpop.permute.xlu0 %202  ;;  %v478_v35 = vpack.c.bf16 %v223_v31, %v210_v33  ;;  %v546_v38 = vpop.permute.xlu1 %545 }
  0x92   : > { %v209_v36 = vsel %vm208_vm9, %v203_v34, %v527_v30  ;;  %v548_v42 = vunpack.i.h.bf16 %v546_v38  ;;  %v547_v43 = vunpack.i.l.bf16 %v546_v38 }
  0x93   : > { %v481_v37 = vpack.c.bf16 %v222_v32, %v209_v36  ;;  %480 = vmatprep.subr.msk.bf16.mxu0 %vm479_vm11, %v478_v35 }
  0x94   : > { %v292_v52 = vsel %vm290_vm14, %v547_v43, %v548_v42 }
  0x95   : > { %v536_v39 = vpop.permute.xlu0 %535  ;;  %483 = vmatpush1.bf16.msk.msra.mxu0 %vm482_vm12, %v481_v37  ;;  %v285_v49 = vpop.permute.xlu1 %284 }
  0x96   : > { %v538_v40 = vunpack.i.h.bf16 %v536_v39  ;;  %v537_v41 = vunpack.i.l.bf16 %v536_v39  ;;  %v291_v53 = vsel %vm290_vm14, %v285_v49, %v547_v43 }
  0x98   : > { %v241_v44 = vsel %vm240_vm13, %v235_v28, %v537_v41  ;;  %v242_v45 = vsel %vm240_vm13, %v537_v41, %v538_v40 }
  0x99   : > { %v484_v46 = vpack.c.bf16 %v242_v45, %v605_v2  ;;  %v487_v47 = vpack.c.bf16 %v241_v44, %v603_v1  ;;  %v541_v48 = vpop.permute.xlu0 %540  ;;  %v265_v59 = vpop.permute.xlu1 %264 }
  0x9a   : > { %v543_v50 = vunpack.i.h.bf16 %v541_v48  ;;  %v542_v51 = vunpack.i.l.bf16 %v541_v48 }
  0x9b   : > { %486 = vmatprep.subr.msk.bf16.mxu0 %vm485_vm15, %v484_v46 }
  0x9c   : > { %489 = vmatpush1.bf16.msk.msra.mxu0 %vm488_vm0, %v487_v47  ;;  %v255_v54 = vsel %vm253_vm1, %v542_v51, %v543_v50 }
  0x9d   : > { %v248_v55 = vpop.permute.xlu0 %247  ;;  %v490_v56 = vpack.c.bf16 %v292_v52, %v255_v54 }
  0x9e   : > { %v254_v57 = vsel %vm253_vm1, %v248_v55, %v542_v51 }
  0x9f   : > { %v493_v58 = vpack.c.bf16 %v291_v53, %v254_v57  ;;  %492 = vmatprep.subr.msk.bf16.mxu0 %vm631_vm6, %v490_v56 }
  0xa1   : > { %v263_v60 = vpop.permute.xlu0 %262  ;;  %495 = vmatpush1.bf16.msk.msra.mxu0 %vm640_vm8, %v493_v58 }
  0xa2   : > { %v268_v61 = vsel %vm266_vm2, %v263_v60, %v265_v59 }
  0xa3   : > { %460 = vmatprep.subr.msk.mxu0 %vm470_vm7, %v268_v61 }
  0xa5   : > { %v261_v62 = vpop.permute.xlu0 %260 }
  0xa6   : > { %v267_v0 = vsel %vm266_vm2, %v261_v62, %v263_v60 }
  0xa7   : > { %462 = vmatpush1.msk.msra.mxu0 %vm471_vm10, %v267_v0 }
  0xa8   : > { %463 = vmatmul.mubr.msk.f32.vlgmr.msra.gmra.mrb[0].mxu0 %vm296_vm3, %v295_v63 }
 0x17b   : > { %v366_v3 = vpop.f32.mrb[0].mxu0 }
 0x17c   : > { %v367_v4 = vadd.f32 %v366_v3, %v603_v1  ;;  %v368_v5 = vpop.f32.mrb[1].mxu0 }
 0x17d   : > { %v369_v6 = vadd.f32 %v368_v5, %v605_v2 }
 0x17e   : > { %v371_v7 = vmax.f32 %v367_v4, 0.0 }
 0x17f   : > { %v372_v8 = vmax.f32 %v369_v6, 0.0 }
 0x180   : > { %373 = vst [vmem:[%s170_s7] sm:$0xff] %v371_v7 }
 0x181   : > { %374 = vst [vmem:[%s170_s7 + $0x8] sm:$0xff] %v372_v8 }
 0x182 PF: > { %s13_s12 = sadd.s32 1, %s555_s12  }
 0x183   : > { %p10_p4 = scmp.ge.s32.totalorder %s13_s12, 4  }
 0x185   :  { %12 = sbr.rel (!%p10_p4) target bundleno = 1 (0x1), region = 62 }

</bundles_post_ra>
